<compile_context>
chip_gen: v7x
topology: tpu7x:2x2x1
jax: 0.10.0
libtpu: 0.0.40
codegen_flags: <defaults>
</compile_context>

<pallas_src>
import functools

import jax
import jax.numpy as jnp
from jax import lax
from jax.experimental import pallas as pl
from jax.experimental.pallas import tpu as pltpu


def _round_up(a, b):
    return (a + b - 1) // b * b


def _capsule_relu_kernel(x_ref, o_ref, *, capsule_dim, eps, ln_eps,
                         n_norm, valid_rows, valid_lanes):
    tb, cdp, hwp = x_ref.shape
    f32 = jnp.float32

    # ---- hoisted, shared across the TB samples of this block -----------------
    # 0/1 "same capsule" matrix: gmat[r, q] = 1 iff r // D == q // D.
    # ss = gmat @ (x * x) yields every capsule's squared L2 norm, already broadcast
    # over that capsule's D rows, without any cross-sublane reshape/relayout.
    inv_d = 1.0 / capsule_dim
    ri = lax.broadcasted_iota(jnp.int32, (cdp, cdp), 0).astype(f32)
    ci = lax.broadcasted_iota(jnp.int32, (cdp, cdp), 1).astype(f32)
    gmat = (jnp.floor((ri + 0.5) * inv_d) ==
            jnp.floor((ci + 0.5) * inv_d)).astype(jnp.bfloat16)

    need_mask = (valid_rows < cdp) or (valid_lanes < hwp)
    if need_mask:
        row_ok = lax.broadcasted_iota(jnp.int32, (cdp, hwp), 0) < valid_rows
        lane_ok = lax.broadcasted_iota(jnp.int32, (cdp, hwp), 1) < valid_lanes
        valid = jnp.logical_and(row_ok, lane_ok)

    # Each capsule magnitude appears capsule_dim times along the row axis.
    inv_n = 1.0 / (capsule_dim * n_norm)
    out_is_bf16 = jnp.dtype(o_ref.dtype) == jnp.bfloat16

    def group_sum(v):
        # Exact bf16x3 split -> three bf16 MXU matmuls with f32 accumulation.
        h1 = v.astype(jnp.bfloat16)
        r1 = v - h1.astype(f32)
        h2 = r1.astype(jnp.bfloat16)
        h3 = (r1 - h2.astype(f32)).astype(jnp.bfloat16)
        out = jnp.dot(gmat, h1, preferred_element_type=f32)
        out = out + jnp.dot(gmat, h2, preferred_element_type=f32)
        out = out + jnp.dot(gmat, h3, preferred_element_type=f32)
        return out

    for t in range(tb):  # static unroll; TB is kept small by the wrapper
        xs = x_ref[t]                                   # (cdp, hwp), input dtype
        xf = xs.astype(f32)
        ss = jnp.maximum(group_sum(xf * xf), 0.0)       # per-capsule sum of squares

        mag = jnp.maximum(jnp.sqrt(ss), eps)            # clamp_min(||x||_2, eps)
        # 1 / clamp_min(sqrt(ss), eps): rsqrt runs on the (otherwise idle) EUP.
        inv_mag = jnp.minimum(lax.rsqrt(ss), 1.0 / eps)

        magv = jnp.where(valid, mag, 0.0) if need_mask else mag
        mean = jnp.sum(jnp.sum(magv, axis=1, keepdims=True),
                       axis=0, keepdims=True) * inv_n            # (1, 1)
        cen = mag - mean
        cenv = jnp.where(valid, cen, 0.0) if need_mask else cen
        var = jnp.sum(jnp.sum(cenv * cenv, axis=1, keepdims=True),
                      axis=0, keepdims=True) * inv_n             # biased variance
        mag_ln = cen * lax.rsqrt(var + ln_eps)

        scale = jnp.maximum(mag_ln, 0.0) * inv_mag      # relu(LN(mag)) / mag
        if out_is_bf16:
            # Keep the dominant broadcast multiply in bf16 on v6e/v7x.
            o_ref[t] = (scale.astype(jnp.bfloat16) * xs).astype(o_ref.dtype)
        else:
            o_ref[t] = (scale * xf).astype(o_ref.dtype)


def _vmem_capacity_bytes():
    try:
        cap = getattr(pltpu.get_tpu_info(), "vmem_capacity_bytes", None)
        if cap:
            return int(cap)
    except Exception:
        pass
    return 64 * 1024 * 1024  # conservative default (v7x per-TensorCore VMEM)


def _vmem_estimate(tb, cdp, hwp, itemsize):
    block = tb * cdp * hwp * itemsize
    # double-buffered input + output blocks, plus ~10 f32 temporaries per sample slice
    return 4 * block + 10 * cdp * hwp * 4 + (2 << 20)


def _pick_tb(batch, cdp, hwp, itemsize, budget):
    sample_block = cdp * hwp * itemsize
    # pack samples until blocks reach ~1 MiB; cap the static unroll at 8
    tb_cap = min(batch, 8, max(1, (1 << 20) // max(sample_block, 1)))
    if batch >= 2:
        # keep the "parallel" grid extent >= 2 so both v7x TensorCores get work
        tb_cap = min(tb_cap, max(1, batch // 2))
    for tb in range(tb_cap, 0, -1):
        if batch % tb == 0 and _vmem_estimate(tb, cdp, hwp, itemsize) <= budget:
            return tb
    return 1


def capsule_relu(x, *, eps=1e-5, ln_eps=1e-5):
    """x: (B, C, D, H, W) float array (capsule axis = dim 2). Same shape/dtype out."""
    if x.ndim != 5:
        raise ValueError(f"expected 5D input (got {x.ndim}D input)")
    B, C, D, H, W = x.shape
    HW, CD = H * W, C * D
    itemsize = jnp.dtype(x.dtype).itemsize
    sub = 8 if itemsize >= 4 else (16 if itemsize == 2 else 32)
    CDp = _round_up(CD, sub)    # dense, tile-aligned sublane extent
    HWp = _round_up(HW, 128)    # lane-dense last dim (unmasked vst)

    x_flat = x.reshape(B, CD, HW)
    if CDp != CD or HWp != HW:
        x_flat = jnp.pad(x_flat, ((0, 0), (0, CDp - CD), (0, HWp - HW)))

    vmem_cap = _vmem_capacity_bytes()
    budget = int(vmem_cap * 0.75)
    TB = _pick_tb(B, CDp, HWp, itemsize, budget)
    vmem_limit = int(min(vmem_cap * 0.9,
                         max(1.25 * _vmem_estimate(TB, CDp, HWp, itemsize),
                             32 * 1024 * 1024)))

    kernel = functools.partial(
        _capsule_relu_kernel,
        capsule_dim=D, eps=float(eps), ln_eps=float(ln_eps),
        n_norm=float(C * HW), valid_rows=CD, valid_lanes=HW)

    out_flat = pl.pallas_call(
        kernel,
        out_shape=jax.ShapeDtypeStruct((B, CDp, HWp), x.dtype),
        grid=(B // TB,),
        in_specs=[pl.BlockSpec((TB, CDp, HWp), lambda b: (b, 0, 0))],
        out_specs=pl.BlockSpec((TB, CDp, HWp), lambda b: (b, 0, 0)),
        compiler_params=pltpu.CompilerParams(
            dimension_semantics=("parallel",),
            vmem_limit_bytes=vmem_limit,
        ),
    )(x_flat)

    return out_flat[:, :CD, :HW].reshape(B, C, D, H, W)


def _reference(x, eps=1e-5, ln_eps=1e-5):
    # Pure-JAX reference mirroring the PyTorch module (computed in f32).
    xf = x.astype(jnp.float32)
    mag = jnp.maximum(jnp.sqrt(jnp.sum(xf * xf, axis=2, keepdims=True)), eps)
    mean = jnp.mean(mag, axis=(1, 2, 3, 4), keepdims=True)
    var = jnp.mean((mag - mean) ** 2, axis=(1, 2, 3, 4), keepdims=True)
    mag_ln = (mag - mean) / jnp.sqrt(var + ln_eps)
    return (jnp.maximum(mag_ln, 0.0) / mag * xf).astype(x.dtype)


if __name__ == "__main__":
    key0, key1 = jax.random.split(jax.random.PRNGKey(0))

    # Case 1: aligned capsule shapes (C*D = 8 sublanes, H*W = 256 lanes).
    B, C, D, H, W = 2, 4, 2, 16, 16
    x = jax.random.normal(key0, (B, C, D, H, W), dtype=jnp.float32)
    out = jax.block_until_ready(capsule_relu(x))
    ref = _reference(x)
    assert out.shape == (B, C, D, H, W)
    err1 = float(jnp.max(jnp.abs(out - ref)))
    assert jnp.allclose(out, ref, atol=2e-5, rtol=2e-5), f"case1 max err {err1}"

    # Case 2: unaligned shapes exercising row/lane padding + masked LN statistics.
    B2, C2, D2, H2, W2 = 2, 3, 2, 7, 7
    x2 = jax.random.normal(key1, (B2, C2, D2, H2, W2), dtype=jnp.float32)
    out2 = jax.block_until_ready(capsule_relu(x2))
    ref2 = _reference(x2)
    assert out2.shape == (B2, C2, D2, H2, W2)
    err2 = float(jnp.max(jnp.abs(out2 - ref2)))
    assert jnp.allclose(out2, ref2, atol=2e-5, rtol=2e-5), f"case2 max err {err2}"

    print("KERNEL_OK")
</pallas_src>

<mosaic_0001>
module attributes {stable_mosaic.version = 11 : i64} {
  func.func @_capsule_relu_kernel(%arg0: i32, %arg1: memref<1x8x256xf32, #tpu.memory_space<vmem>>, %arg2: memref<1x8x256xf32, #tpu.memory_space<vmem>>) attributes {dimension_semantics = [#tpu.dimension_semantics<parallel>], iteration_bounds = array<i64: 2>, scalar_prefetch = 0 : i64, scratch_operands = 0 : i64, tpu.core_type = #tpu.core_type<tc>, window_params = [{transform_indices = @transform_0, window_bounds = array<i64: 1, 8, 256>}, {transform_indices = @transform_1, window_bounds = array<i64: 1, 8, 256>}]} {
    %0 = tpu.iota {dimensions = array<i32: 0>} : vector<8x8xi32>
    %1 = arith.sitofp %0 : vector<8x8xi32> to vector<8x8xf32>
    %2 = tpu.iota {dimensions = array<i32: 1>} : vector<8x8xi32>
    %3 = arith.sitofp %2 : vector<8x8xi32> to vector<8x8xf32>
    %cst = arith.constant 5.000000e-01 : f32
    %4 = vector.broadcast %cst : f32 to vector<8x8xf32>
    %5 = arith.addf %1, %4 : vector<8x8xf32>
    %cst_0 = arith.constant 5.000000e-01 : f32
    %6 = vector.broadcast %cst_0 : f32 to vector<8x8xf32>
    %7 = arith.mulf %5, %6 : vector<8x8xf32>
    %8 = math.floor %7 : vector<8x8xf32>
    %cst_1 = arith.constant 5.000000e-01 : f32
    %9 = vector.broadcast %cst_1 : f32 to vector<8x8xf32>
    %10 = arith.addf %3, %9 : vector<8x8xf32>
    %cst_2 = arith.constant 5.000000e-01 : f32
    %11 = vector.broadcast %cst_2 : f32 to vector<8x8xf32>
    %12 = arith.mulf %10, %11 : vector<8x8xf32>
    %13 = math.floor %12 : vector<8x8xf32>
    %14 = arith.cmpf oeq, %8, %13 : vector<8x8xf32>
    %15 = arith.extui %14 : vector<8x8xi1> to vector<8x8xi32>
    %16 = arith.sitofp %15 : vector<8x8xi32> to vector<8x8xf32>
    %17 = arith.truncf %16 : vector<8x8xf32> to vector<8x8xbf16>
    %c0 = arith.constant 0 : index
    %c0_3 = arith.constant 0 : index
    %c0_4 = arith.constant 0 : index
    %18 = vector.load %arg1[%c0, %c0_3, %c0_4] : memref<1x8x256xf32, #tpu.memory_space<vmem>>, vector<1x8x256xf32>
    %19 = vector.shape_cast %18 : vector<1x8x256xf32> to vector<8x256xf32>
    %20 = arith.mulf %19, %19 : vector<8x256xf32>
    %21 = arith.truncf %20 : vector<8x256xf32> to vector<8x256xbf16>
    %22 = arith.extf %21 : vector<8x256xbf16> to vector<8x256xf32>
    %23 = arith.subf %20, %22 : vector<8x256xf32>
    %24 = arith.truncf %23 : vector<8x256xf32> to vector<8x256xbf16>
    %25 = arith.extf %24 : vector<8x256xbf16> to vector<8x256xf32>
    %26 = arith.subf %23, %25 : vector<8x256xf32>
    %27 = arith.truncf %26 : vector<8x256xf32> to vector<8x256xbf16>
    %cst_5 = arith.constant dense<0.000000e+00> : vector<8x256xf32>
    %28 = tpu.matmul %17, %21, %cst_5 {dimension_numbers = #tpu.dot_dimension_numbers<[1], [0], [0], [1], [0, 0, 1, 1], [], []>} : vector<8x8xbf16>, vector<8x256xbf16>, vector<8x256xf32> -> vector<8x256xf32>
    %cst_6 = arith.constant dense<0.000000e+00> : vector<8x256xf32>
    %29 = tpu.matmul %17, %24, %cst_6 {dimension_numbers = #tpu.dot_dimension_numbers<[1], [0], [0], [1], [0, 0, 1, 1], [], []>} : vector<8x8xbf16>, vector<8x256xbf16>, vector<8x256xf32> -> vector<8x256xf32>
    %30 = arith.addf %28, %29 : vector<8x256xf32>
    %cst_7 = arith.constant dense<0.000000e+00> : vector<8x256xf32>
    %31 = tpu.matmul %17, %27, %cst_7 {dimension_numbers = #tpu.dot_dimension_numbers<[1], [0], [0], [1], [0, 0, 1, 1], [], []>} : vector<8x8xbf16>, vector<8x256xbf16>, vector<8x256xf32> -> vector<8x256xf32>
    %32 = arith.addf %30, %31 : vector<8x256xf32>
    %cst_8 = arith.constant 0.000000e+00 : f32
    %33 = vector.broadcast %cst_8 : f32 to vector<8x256xf32>
    %34 = arith.maximumf %32, %33 : vector<8x256xf32>
    %35 = math.sqrt %34 : vector<8x256xf32>
    %cst_9 = arith.constant 9.99999974E-6 : f32
    %36 = vector.broadcast %cst_9 : f32 to vector<8x256xf32>
    %37 = arith.maximumf %35, %36 : vector<8x256xf32>
    %38 = math.rsqrt %34 : vector<8x256xf32>
    %cst_10 = arith.constant 1.000000e+05 : f32
    %39 = vector.broadcast %cst_10 : f32 to vector<8x256xf32>
    %40 = arith.minimumf %38, %39 : vector<8x256xf32>
    %cst_11 = arith.constant dense<0.000000e+00> : vector<8xf32>
    %41 = vector.multi_reduction <add>, %37, %cst_11 [1] : vector<8x256xf32> to vector<8xf32>
    %42 = vector.shape_cast %41 : vector<8xf32> to vector<8x1xf32>
    %cst_12 = arith.constant dense<0.000000e+00> : vector<1xf32>
    %43 = vector.multi_reduction <add>, %42, %cst_12 [0] : vector<8x1xf32> to vector<1xf32>
    %44 = vector.shape_cast %43 : vector<1xf32> to vector<1x1xf32>
    %cst_13 = arith.constant 4.8828125E-4 : f32
    %45 = vector.broadcast %cst_13 : f32 to vector<1x1xf32>
    %46 = arith.mulf %44, %45 : vector<1x1xf32>
    %47 = vector.broadcast %46 : vector<1x1xf32> to vector<8x256xf32>
    %48 = arith.subf %37, %47 : vector<8x256xf32>
    %49 = arith.mulf %48, %48 : vector<8x256xf32>
    %cst_14 = arith.constant dense<0.000000e+00> : vector<8xf32>
    %50 = vector.multi_reduction <add>, %49, %cst_14 [1] : vector<8x256xf32> to vector<8xf32>
    %51 = vector.shape_cast %50 : vector<8xf32> to vector<8x1xf32>
    %cst_15 = arith.constant dense<0.000000e+00> : vector<1xf32>
    %52 = vector.multi_reduction <add>, %51, %cst_15 [0] : vector<8x1xf32> to vector<1xf32>
    %53 = vector.shape_cast %52 : vector<1xf32> to vector<1x1xf32>
    %cst_16 = arith.constant 4.8828125E-4 : f32
    %54 = vector.broadcast %cst_16 : f32 to vector<1x1xf32>
    %55 = arith.mulf %53, %54 : vector<1x1xf32>
    %cst_17 = arith.constant 9.99999974E-6 : f32
    %56 = vector.broadcast %cst_17 : f32 to vector<1x1xf32>
    %57 = arith.addf %55, %56 : vector<1x1xf32>
    %58 = math.rsqrt %57 : vector<1x1xf32>
    %59 = vector.broadcast %58 : vector<1x1xf32> to vector<8x256xf32>
    %60 = arith.mulf %48, %59 : vector<8x256xf32>
    %cst_18 = arith.constant 0.000000e+00 : f32
    %61 = vector.broadcast %cst_18 : f32 to vector<8x256xf32>
    %62 = arith.maximumf %60, %61 : vector<8x256xf32>
    %63 = arith.mulf %62, %40 : vector<8x256xf32>
    %64 = arith.mulf %63, %19 : vector<8x256xf32>
    %c0_19 = arith.constant 0 : index
    %c0_20 = arith.constant 0 : index
    %c0_21 = arith.constant 0 : index
    %65 = vector.load %arg2[%c0_19, %c0_20, %c0_21] : memref<1x8x256xf32, #tpu.memory_space<vmem>>, vector<1x8x256xf32>
    %66 = vector.shape_cast %65 : vector<1x8x256xf32> to vector<8x256xf32>
    %67 = vector.shape_cast %64 : vector<8x256xf32> to vector<1x8x256xf32>
    tpu.vector_store %arg2[%c0_19, %c0_20, %c0_21], %67 {strides = array<i32>} : memref<1x8x256xf32, #tpu.memory_space<vmem>>, vector<1x8x256xf32>,
    return
  }
  func.func @transform_0(%arg0: i32) -> (i32, i32, i32) {
    %c0_i32 = arith.constant 0 : i32
    %c0_i32_0 = arith.constant 0 : i32
    %c0_i32_1 = arith.constant 0 : i32
    return %arg0, %c0_i32, %c0_i32_0 : i32, i32, i32
  }
  func.func @transform_1(%arg0: i32) -> (i32, i32, i32) {
    %c0_i32 = arith.constant 0 : i32
    %c0_i32_0 = arith.constant 0 : i32
    %c0_i32_1 = arith.constant 0 : i32
    return %arg0, %c0_i32, %c0_i32_0 : i32, i32, i32
  }
}

</mosaic_0001>

<bundles_post_ra>
// kernel: tpu_custom_call.1
= control target key start
LH: loop header
LB: loop body
LE: loop exit
PB: predicated region body
PF: predicated region fallthrough
CT: control target
= control target key end

     0   :  { %6 = vsyncpa [#allocation3], 0  ;;  %s838_s0 = inlined_call_operand.hbm [shape: f32[2,8,256], index: 0, kind: input, shape index: {}]   ;;  %s839_s1 = inlined_call_operand.hbm [shape: f32[2,8,256], index: 1, kind: output, shape index: {}]  }
   0x1   :  { %8 = vsyncpa [#allocation3 + $0x1], 0 }
   0x2   :  { %9 = vsyncpa [#allocation4], 0 }
   0x3   :  { %11 = vsyncpa [#allocation4 + $0x1], 0  ;;  %s654_s6 = smov 0   ;;  %s656_s7 = smov 0  }
   0x4   :  { %s658_s8 = smov 0   ;;  %s660_s9 = smov 0  }
   0x5 LB: > { %s675_s10 = sadd.s32 4294967295, %s638_s9   ;;  %s459_s11 = sadd.s32 4294967294, %s638_s9   ;;  %s638_s9 = sphi %s660_s9, %s854_s9   ;;  %s634_s8 = sphi %s658_s8, %s853_s8   ;;  %s630_s7 = sphi %s656_s7, %s852_s7   ;;  %s626_s6 = sphi %s654_s6, %s851_s6  }
   0x6   : > { %s679_s12 = sadd.s32 1, %s638_s9   ;;  %s24_s13 = sadd.s32 1, %s634_s8 }
   0x7   : > { %s21_s14 = ssub.s32 %s638_s9, %s679_s12  ;;  %p31_p0 = scmp.ne.s32.totalorder %s634_s8, %s630_s7 }
   0x8   : > { %p22_p1 = scmp.eq.s32.totalorder %s21_s14, 0  ;;  %p32_p2 = scmp.eq.s32.totalorder %s638_s9, 0 }
   0x9   : > { %p37_p3 = scmp.ne.s32.totalorder %s630_s7, %s626_s6  ;;  %p38_p4 = scmp.eq.s32.totalorder %s675_s10, 0 }
   0xa   : > { %s691_s15 = scalar_select %p22_p1, %s634_s8, %s24_s13  }
   0xb   : > { %p693_p5 = por %p32_p2, %p31_p0  ;;  %p697_p6 = por %p38_p4, %p37_p3 }
   0xc   : > { %p61_p7 = scmp.eq.s32.totalorder %s675_s10, 1  ;;  %p67_p8 = scmp.eq.s32.totalorder %s459_s11, 1 }
   0xd   : > { %p500_p10 = scmp.lt.s32.totalorder %s638_s9, 2  ;;  %s87_s20 = sand.u32 1, %s634_s8  }
   0xe   : > { %p704_p11 = por %p61_p7, %p31_p0  ;;  %p708_p12 = por %p67_p8, %p37_p3 }
   0xf   : > { %s480_s21 = sshll.u32 %s638_s9, 8  ;;  %s462_s22 = sshll.u32 %s87_s20, 4 }
  0x10   : > { %s843_s18 = scalar_select %p704_p11, 1, 0 }
  0x11   : > { %s844_s19 = scalar_select %p708_p12, 1, 0 }
  0x12   : > { %s717_s25 = scalar_lea.hbm %s838_s0, %s480_s21  ;;  %s91_s26 = scalar_lea.vmem [#allocation2], %s462_s22 }
  0x13   : > { %s99_s27 = sshll.u32 %s91_s26, 4  ;;  %p721_p13 = pnand %p500_p10, %p693_p5  ;;  %s725_s27 = int_to_ptr.vmem [resolvable:$true] %s99_s27 }
  0x14   : > { %s88_s29 = scalar_lea.sflag [#allocation3], %s87_s20  ;;  %s542_s30 = scalar_lea.hbm %s717_s25, 256 }
  0x15   : > { %p543_p2 = scmp.ne.s32.totalorder %s717_s25, %s542_s30  ;;  %p544_p3 = pneg %p721_p13 }
  0x16   : > { %s547_s4 = scalar_lea.hbm %s838_s0, 512  ;;  %p548_p5 = scmp.lt.u32.totalorder %s717_s25, %s838_s0 }
  0x17   : > { %p545_p4 = pnand %p544_p3, %p543_p2  ;;  %p549_p8 = scmp.lt.u32.totalorder %s547_s4, %s542_s30 }
  0x18   : > { %p551_p9 = scmp.lt.u32.totalorder %s542_s30, %s717_s25 }
  0x19   : > { %p546_p7 = pneg %p545_p4  ;;  %p550_p10 = por %p549_p8, %p548_p5 }
  0x1b   : > { %p552_p0 = por %p551_p9, %p550_p10 }
  0x1d   : > { %p553_p1 = pnand %p552_p0, %p546_p7 }
  0x1f   : > { %556 = shalt.err (!%p553_p1)
}
  0x20   : > { %s557_s13 = scalar_lea.vmem %s725_s27, 256  ;;  %s640_s14 = smov [#allocation2]  }
  0x21   : > { %p558_p2 = scmp.ne.s32.totalorder %s725_s27, %s557_s13  ;;  %s562_s16 = sshll.u32 %s640_s14, 4  ;;  %s563_s16 = int_to_ptr.vmem [resolvable:$false] %s562_s16 }
  0x22   : > { %s564_s20 = scalar_lea.vmem %s563_s16, 512  ;;  %p565_p11 = scmp.lt.s32.totalorder %s725_s27, %s563_s16 }
  0x23   : > { %p560_p4 = pnand %p558_p2, %p544_p3  ;;  %p566_p5 = scmp.lt.s32.totalorder %s564_s20, %s557_s13 }
  0x25   : > { %p561_p12 = pneg %p560_p4  ;;  %p567_p8 = por %p566_p5, %p565_p11 }
  0x27   : > { %p568_p9 = pnand %p567_p8, %p561_p12 }
  0x29   : > { %571 = shalt.err (!%p568_p9)
}
  0x2a   : > { %495 = dma.hbm_to_vmem [thread:$0]  (!%p721_p13), %s717_s25, 256, %s725_s27, %s88_s29  }
  0x2b   : > { %p846_p0 = scmp.lt.s32.totalorder %s638_s9, 3  ;;  %p847_p1 = scmp.ge.s32.totalorder %s638_s9, 1 }
  0x2d   : > { %p105_p3 = pnand %p847_p1, %p846_p0 }
  0x2e   : > { %s759_s21 = sand.u32 (!%p105_p3), 1, %s630_s7  }
  0x2f   : > { %108 = sbr.rel (%p105_p3) target bundleno = 672 (0x2a0), region = 24  ;;  %s466_s22 = sshll.u32 (!%p105_p3), %s759_s21, 4 }
  0x30   : > { %s111_s23 = scalar_lea.sflag (!%p105_p3), [#allocation3], %s759_s21  ;;  %s114_s24 = scalar_lea.vmem (!%p105_p3), [#allocation2], %s466_s22 }
  0x36   : > { %617 = dma.done.wait (%p697_p6), %s111_s23, 256  }
  0x37   : > { %619 = vsyncadd (%p697_p6), %s111_s23, 4294967040  ;;  %v134_v0 = vlaneseq  ;;  %v641_v1 = vmov 0   ;;  %v769_v8 = vld [vmem:[%s114_s24 + $0x8] sm:$0xff]  ;;  %v771_v9 = vld [vmem:[%s114_s24] sm:$0xff]  ;;  %vm172_vm0 = vcmask 1043456   ;;  %v642_v21 = vmov 0.0  }
  0x38   : > { %258 = vmatprep.mubr.bf16.mxu0 %v641_v1  ;;  %211 = vmatprep.mubr.bf16.mxu1 %v641_v1  ;;  %v153_v10 = vmul.f32 %v769_v8, %v769_v8  ;;  %v152_v11 = vmul.f32 %v771_v9, %v771_v9  ;;  %vm168_vm2 = vcmask 64512   ;;  %s481_s17 = sshll.u32 %s675_s10, 8  ;;  %s132_s25 = scalar_lea.vmem [#allocation5], %s466_s22 }
  0x39   : > { %v135_v2 = vshrl.u32 %v134_v0, 7  ;;  %v138_v3 = vand.u32 127, %v134_v0  ;;  %s389_s26 = sshll.u32 %s132_s25, 4  ;;  %s794_s29 = scalar_lea.hbm %s839_s1, %s481_s17  ;;  %s796_s26 = int_to_ptr.vmem [resolvable:$true] %s389_s26 }
  0x3a   : > { %v155_v14 = vpack.c.bf16 %v153_v10, %v153_v10  ;;  %v154_v15 = vpack.c.bf16 %v152_v11, %v152_v11  ;;  %s375_s10 = scalar_lea.sflag [#allocation4], %s759_s21  ;;  %s572_s30 = scalar_lea.vmem %s796_s26, 256 }
  0x3b   : > { %v136_v4 = vcvt.s32.f32 %v135_v2  ;;  %v139_v5 = vcvt.s32.f32 %v138_v3  ;;  %p573_p6 = scmp.ne.s32.totalorder %s796_s26, %s572_s30  ;;  %p848_p11 = scmp.ne.s32.totalorder %s843_s18, 0 }
  0x3c   : > { %v157_v18 = vunpack.c.l.bf16 %v155_v14  ;;  %471 = vmatprep.subr.msk.bf16.mxu0 %vm172_vm0, %v155_v14  ;;  %v156_v19 = vunpack.c.l.bf16 %v154_v15  ;;  %v221_v20 = vsel %vm172_vm0, %v154_v15, 0  ;;  %s643_s2 = smov [#allocation5]  }
  0x3d   : > { %v140_v6 = vadd.f32 0.5, %v136_v4  ;;  %v143_v7 = vadd.f32 0.5, %v139_v5  ;;  %227 = vmatpush1.bf16.msra.mxu0 %v221_v20  ;;  %p574_p12 = pnand %p573_p6, %p848_p11  ;;  %s576_s3 = sshll.u32 %s643_s2, 4  ;;  %s577_s3 = int_to_ptr.vmem [resolvable:$false] %s576_s3 }
  0x3e   : > { %v159_v24 = vsub.f32 %v153_v10, %v157_v18  ;;  %v158_v25 = vsub.f32 %v152_v11, %v156_v19  ;;  %s578_s4 = scalar_lea.vmem %s577_s3, 512  ;;  %p579_p7 = scmp.lt.s32.totalorder %s796_s26, %s577_s3 }
  0x3f   : > { %v141_v12 = vmul.f32 0.5, %v140_v6  ;;  %v144_v13 = vmul.f32 0.5, %v143_v7  ;;  %p575_p13 = pneg %p574_p12  ;;  %p580_p10 = scmp.lt.s32.totalorder %s578_s4, %s572_s30 }
  0x40   : > { %v161_v26 = vpack.c.bf16 %v159_v24, %v159_v24  ;;  %v160_v27 = vpack.c.bf16 %v158_v25, %v158_v25 }
  0x41   : > { %v142_v16 = vfloor.f32 %v141_v12  ;;  %v145_v17 = vfloor.f32 %v144_v13  ;;  %p581_p2 = por %p580_p10, %p579_p7 }
  0x42   : > { %v163_v28 = vunpack.c.l.bf16 %v161_v26  ;;  %469 = vmatprep.subr.msk.bf16.mxu1 %vm172_vm0, %v161_v26  ;;  %v162_v29 = vunpack.c.l.bf16 %v160_v27  ;;  %v174_v30 = vsel %vm172_vm0, %v160_v27, 0 }
  0x43   : > { %vm146_vm1 = vcmp.eq.f32.partialorder %v142_v16, %v145_v17  ;;  %180 = vmatpush1.bf16.msra.mxu1 %v174_v30  ;;  %p582_p4 = pnand %p581_p2, %p575_p13 }
  0x44   : > { %v468_v22 = vsel %vm146_vm1, 1.0, %v642_v21  ;;  %v165_v31 = vsub.f32 %v159_v24, %v163_v28  ;;  %v164_v32 = vsub.f32 %v158_v25, %v162_v29 }
  0x45   : > { %v149_v23 = vpack.c.bf16 %v468_v22, %v468_v22 }
  0x46   : > { %v167_v33 = vpack.c.bf16 %v165_v31, %v165_v31  ;;  %v166_v34 = vpack.c.bf16 %v164_v32, %v164_v32 }
  0x47   : > { %472 = vmatmul.mubr.msk.bf16.vlgmr.msra.gmra.mrb[0].mxu0 %vm168_vm2, %v149_v23  ;;  %470 = vmatmul.mubr.msk.bf16.vlgmr.msra.gmra.mrb[0].mxu1 %vm168_vm2, %v149_v23 }
  0x48   : > { %305 = vmatprep.mubr.bf16.mxu0 %v641_v1  ;;  %473 = vmatprep.subr.msk.bf16.mxu0 %vm172_vm0, %v167_v33  ;;  %v268_v35 = vsel %vm172_vm0, %v166_v34, 0 }
  0x49   : > { %274 = vmatpush1.bf16.msra.mxu0 %v268_v35 }
  0x53   : > { %474 = vmatmul.mubr.msk.bf16.vlgmr.msra.gmra.mrb[0].mxu0 %vm168_vm2, %v149_v23 }
 0x11a   : > { %v213_v36 = vpop.f32.mrb[0].mxu1 }
 0x11b   : > { %v215_v37 = vpop.f32.mrb[1].mxu1 }
 0x11c   : > { %v217_v38 = vpop.f32.mrb[2].mxu1 }
 0x11d   : > { %v218_v39 = vpop.f32.mrb[3].mxu1 }
 0x126   : > { %v307_v40 = vpop.f32.mrb[0].mxu0 }
 0x127   : > { %v482_v41 = vadd.f32 %v307_v40, %v213_v36  ;;  %v309_v42 = vpop.f32.mrb[1].mxu0 }
 0x128   : > { %v483_v43 = vadd.f32 %v309_v42, %v215_v37  ;;  %v311_v44 = vpop.f32.mrb[2].mxu0 }
 0x129   : > { %v316_v45 = vmax.f32 %v482_v41, 0.0  ;;  %v312_v46 = vpop.f32.mrb[3].mxu0 }
 0x12a   : > { %v317_v47 = vmax.f32 %v483_v43, 0.0 }
 0x12b   : > { %536 = vrsqrt.f32 %v316_v45  ;;  %vm320_vm3 = vcmp.eq.f32.partialorder %v316_v45, inf  ;;  %v323_v51 = vand.u32 2147483648, %v316_v45  ;;  %vm322_vm4 = vcmp.eq.f32.partialorder %v316_v45, 0.0 }
 0x12c   : > { %538 = vrsqrt.f32 %v317_v47  ;;  %vm327_vm5 = vcmp.eq.f32.partialorder %v317_v47, inf  ;;  %v330_v54 = vand.u32 2147483648, %v317_v47  ;;  %vm329_vm6 = vcmp.eq.f32.partialorder %v317_v47, 0.0 }
 0x135   : > { %v537_v48 = vpop.eup %536 }
 0x136   : > { %v539_v49 = vpop.eup %538  ;;  %v319_v50 = vmul.f32 %v537_v48, %v316_v45  ;;  %v336_v24 = vmin.f32 %v537_v48, 100000.0 }
 0x137   : > { %v326_v52 = vmul.f32 %v539_v49, %v317_v47  ;;  %v337_v25 = vmin.f32 %v539_v49, 100000.0 }
 0x138   : > { %v321_v53 = vsel %vm320_vm3, %v316_v45, %v319_v50 }
 0x139   : > { %v324_v55 = vsel %vm322_vm4, %v323_v51, %v321_v53  ;;  %v328_v56 = vsel %vm327_vm5, %v317_v47, %v326_v52 }
 0x13a   : > { %v331_v57 = vsel %vm329_vm6, %v330_v54, %v328_v56  ;;  %v332_v58 = vmax.f32 %v324_v55, 1e-05 }
 0x13b   : > { %v333_v59 = vmax.f32 %v331_v57, 1e-05 }
 0x13d   : > { %v338_v60 = vadd.f32 %v333_v59, %v332_v58 }
 0x13f   : > { %339 = vadd.xlane.f32.xlu0 %v338_v60 }
 0x1cc   : > { %v340_v61 = vpop.xlane.xlu0 %339 }
 0x1cd   : > { %v341_v62 = vrot.slane %v340_v61, 4 }
 0x1cf   : > { %v342_v63 = vadd.f32 %v341_v62, %v340_v61 }
 0x1d1   : > { %v343_v0 = vrot.slane %v342_v63, 2 }
 0x1d3   : > { %v344_v1 = vadd.f32 %v343_v0, %v342_v63 }
 0x1d5   : > { %v345_v2 = vrot.slane %v344_v1, 1 }
 0x1d7   : > { %v346_v3 = vadd.f32 %v345_v2, %v344_v1 }
 0x1d9   : > { %v347_v4 = vmul.f32 0.00048828125, %v346_v3 }
 0x1db   : > { %v348_v5 = vsub.f32 %v332_v58, %v347_v4  ;;  %v349_v6 = vsub.f32 %v333_v59, %v347_v4 }
 0x1dd   : > { %v350_v7 = vmul.f32 %v348_v5, %v348_v5  ;;  %v351_v10 = vmul.f32 %v349_v6, %v349_v6 }
 0x1df   : > { %v352_v11 = vadd.f32 %v351_v10, %v350_v7 }
 0x1e1   : > { %353 = vadd.xlane.f32.xlu0 %v352_v11 }
 0x26e   : > { %v354_v12 = vpop.xlane.xlu0 %353 }
 0x26f   : > { %v355_v13 = vrot.slane %v354_v12, 4 }
 0x271   : > { %v356_v14 = vadd.f32 %v355_v13, %v354_v12 }
 0x273   : > { %v357_v15 = vrot.slane %v356_v14, 2 }
 0x275   : > { %v358_v16 = vadd.f32 %v357_v15, %v356_v14 }
 0x277   : > { %v359_v17 = vrot.slane %v358_v16, 1 }
 0x279   : > { %v360_v18 = vadd.f32 %v359_v17, %v358_v16 }
 0x27b   : > { %v361_v19 = vmul.f32 0.00048828125, %v360_v18 }
 0x27d   : > { %v362_v20 = vadd.f32 1e-05, %v361_v19 }
 0x27f   : > { %540 = vrsqrt.f32 %v362_v20 }
 0x289   : > { %v541_v21 = vpop.eup %540 }
 0x28a   : > { %v364_v22 = vmul.f32 %v541_v21, %v348_v5  ;;  %v365_v23 = vmul.f32 %v541_v21, %v349_v6 }
 0x28c   : > { %v366_v26 = vmax.f32 %v364_v22, 0.0  ;;  %v367_v27 = vmax.f32 %v365_v23, 0.0 }
 0x28e   : > { %v368_v28 = vmul.f32 %v366_v26, %v336_v24  ;;  %v369_v29 = vmul.f32 %v367_v27, %v337_v25 }
 0x290   : > { %v370_v30 = vmul.f32 %v368_v28, %v771_v9  ;;  %v371_v31 = vmul.f32 %v369_v29, %v769_v8 }
 0x292   : > { %372 = vst [vmem:[%s132_s25] sm:$0xff] %v370_v30  ;;  %373 = vst [vmem:[%s132_s25 + $0x8] sm:$0xff] %v371_v31 }
 0x293   : > { %585 = shalt.err (!%p582_p4)
}
 0x294   : > { %s586_s5 = scalar_lea.hbm %s794_s29, 256  ;;  %s590_s14 = scalar_lea.hbm %s839_s1, 512 }
 0x295   : > { %p587_p5 = scmp.ne.s32.totalorder %s794_s29, %s586_s5  ;;  %p591_p0 = scmp.lt.u32.totalorder %s794_s29, %s839_s1 }
 0x296   : > { %p592_p1 = scmp.lt.u32.totalorder %s590_s14, %s586_s5  ;;  %p594_p6 = scmp.lt.u32.totalorder %s586_s5, %s794_s29 }
 0x297   : > { %p588_p8 = pnand %p587_p5, %p848_p11 }
 0x298   : > { %p593_p3 = por %p592_p1, %p591_p0 }
 0x299   : > { %p589_p9 = pneg %p588_p8 }
 0x29a   : > { %p595_p12 = por %p594_p6, %p593_p3 }
 0x29c   : > { %p596_p13 = pnand %p595_p12, %p589_p9 }
 0x29e   : > { %599 = shalt.err (!%p596_p13)
}
 0x29f   : > { %490 = dma.vmem_to_hbm [thread:$0]  (%p848_p11), %s796_s26, 256, %s794_s29, %s375_s10  }
 0x2a0 PF: > { %s401_s21 = sand.u32 1, %s626_s6   ;;  %p849_p7 = scmp.ne.s32.totalorder %s844_s19, 0 }
 0x2a1   : > { %p850_p10 = scmp.ge.s32.totalorder %s638_s9, 2  ;;  %s402_s22 = scalar_lea.sflag [#allocation4], %s401_s21 }
 0x2a3   : > { %p497_p2 = pnand %p850_p10, %p849_p7 }
 0x2a5   : > { %621 = dma.done.wait (!%p497_p2), %s402_s22, 256  }
 0x2a6   : > { %623 = vsyncadd (!%p497_p2), %s402_s22, 4294967040  ;;  %p14_p4 = scmp.ge.s32.totalorder %s679_s12, 4   ;;  %s851_s6 = smov %s630_s7 }
 0x2a7   : > { %s852_s7 = smov %s634_s8  ;;  %s853_s8 = smov %s691_s15 }
 0x2a8   : > { %s854_s9 = smov %s679_s12  ;;  %16 = sbr.rel (!%p14_p4) target bundleno = 5 (0x5), region = 69 }
 0x2af   :  { %407 = vsyncpa [#allocation3], 1 }
 0x2b0   :  { %409 = vsyncpa [#allocation3 + $0x1], 1 }
 0x2b1   :  { %410 = vsyncpa [#allocation4], 1 }
 0x2b2   :  { %412 = vsyncpa [#allocation4 + $0x1], 1 }

</bundles_post_ra>
